<compile_context>
chip_gen: v7x
topology: tpu7x:2x2x1
jax: 0.10.0
libtpu: 0.0.40
codegen_flags: <defaults>
</compile_context>

<pallas_src>
import jax
import jax.numpy as jnp
import numpy as np
from jax.experimental import pallas as pl
from jax.experimental.pallas import tpu as pltpu


# --------------------------------------------------------------------------- #
# Kernel body: y = x * a + b  with per-row (a, b) packed as (rt, 2).
# --------------------------------------------------------------------------- #
def _affine_kernel(x_ref, ab_ref, y_ref):
    x = x_ref[...].astype(jnp.float32)          # (rt, ct)
    ab = ab_ref[...]                            # (rt, 2) f32
    a = ab[:, 0:1]                              # (rt, 1)
    b = ab[:, 1:2]                              # (rt, 1)
    y_ref[...] = (x * a + b).astype(y_ref.dtype)


# --------------------------------------------------------------------------- #
# Tiling helpers.
# --------------------------------------------------------------------------- #
def _sublane_base(dtype):
    """Native sublane packing for the dtype: 8 (4B), 16 (2B), 32 (1B)."""
    size = jnp.dtype(dtype).itemsize
    if size >= 4:
        return 8
    if size == 2:
        return 16
    return 32


def _vmem_capacity_bytes():
    """Physical VMEM per TensorCore; conservative fallback if query fails."""
    try:
        return int(pltpu.get_tpu_info().vmem_capacity_bytes)
    except Exception:
        return 64 * 1024 * 1024  # v7x-sized; safe everywhere


def _choose_tiles(rows, hw, itemsize, base, vmem_cap):
    """Pick (rt, ct) so the double-buffered in+out working set fits ~45% of
    VMEM, rt is a multiple of the dtype's sublane base (or == rows), ct a
    multiple of 128 (or == hw), and the grid has >= 2 blocks when possible."""
    budget = int(0.45 * vmem_cap)

    # Lane tile: multiple of 128, capped so even a base-height block fits.
    lane_cap = 4096
    while lane_cap > 128 and 4 * lane_cap * base * itemsize > budget:
        lane_cap //= 2
    ct = hw if hw <= lane_cap else lane_cap

    # Sublane tile: largest multiple of `base` that keeps 4 * rt*ct*itemsize
    # (in + out, double-buffered) within the budget; cap at 1024.
    rt_cap = (budget // (4 * itemsize * max(ct, 1))) // base * base
    rt_cap = max(base, min(1024, rt_cap))
    rt = rows if rows <= rt_cap else rt_cap

    # Megacore: if the grid degenerates to a single block, split the lane axis
    # so both TensorCores (v7x) get work.  v5e/v6e: harmless.
    if pl.cdiv(rows, rt) * pl.cdiv(hw, ct) < 2 and hw >= 256:
        ct = max(128, ((hw // 2) // 128) * 128)

    return rt, ct


# --------------------------------------------------------------------------- #
# Collapse the L-layer affine chain to a single per-channel (a, b).
# --------------------------------------------------------------------------- #
def _collapse_chain(scales, biases, reverse):
    """forward order l = 0..L-1 :  x -> x * exp(s_l) + b_l
       reverse order l = L-1..0 :  x -> (x - b_l) * exp(-s_l)"""
    L, C = scales.shape
    a = jnp.ones((C,), jnp.float32)
    b = jnp.zeros((C,), jnp.float32)
    order = range(L - 1, -1, -1) if reverse else range(L)
    for l in order:  # static, tiny trip count (wrapper-side)
        if reverse:
            e = jnp.exp(-scales[l].astype(jnp.float32))
            a = a * e
            b = (b - biases[l].astype(jnp.float32)) * e
        else:
            e = jnp.exp(scales[l].astype(jnp.float32))
            a = a * e
            b = b * e + biases[l].astype(jnp.float32)
    return a, b


# --------------------------------------------------------------------------- #
# Wrapper mirroring SequentialFlow.forward.
# --------------------------------------------------------------------------- #
def sequential_flow(x_nchw, scales, biases, logpx=None, reverse=False,
                    donate_x=False):
    """
    x_nchw : (N, C, H, W)
    scales : (L, C)   per-layer per-channel log-scale
    biases : (L, C)   per-layer per-channel bias
    logpx  : optional (N, 1)
    donate_x : alias the output onto x's buffer (caller must be able to donate)
    Returns (y_nchw, logpx_out_or_None, logdet) mirroring SequentialFlow.forward.
    """
    N, C, H, W = x_nchw.shape
    HW = H * W
    rows = N * C
    itemsize = jnp.dtype(x_nchw.dtype).itemsize

    # ---- collapse the whole chain to one affine (wrapper-side, tiny) --------
    a_c, b_c = _collapse_chain(scales, biases, reverse)              # (C,) each
    ab_rows = jnp.stack([jnp.tile(a_c, N), jnp.tile(b_c, N)], axis=1)  # (rows,2)
    ab_rows = ab_rows.astype(jnp.float32)

    # ---- logdet / logpx: parameter-only math, outside the kernel ------------
    sign = -1.0 if reverse else 1.0
    ld_scalar = sign * jnp.float32(HW) * jnp.sum(scales.astype(jnp.float32))
    logdet = jnp.broadcast_to(ld_scalar, (N, 1)).astype(jnp.float32)
    lp_out = None if logpx is None else (logpx - logdet)

    # ---- lane/sublane-dense 2D streaming layout ------------------------------
    # Free (bitcast) for default contiguous NCHW layout.
    x2 = x_nchw.reshape(rows, HW)

    base = _sublane_base(x_nchw.dtype)
    vmem_cap = _vmem_capacity_bytes()
    rt, ct = _choose_tiles(rows, HW, itemsize, base, vmem_cap)
    grid = (pl.cdiv(rows, rt), pl.cdiv(HW, ct))

    # VMEM limit derived from the actual working set (in + out double-buffered
    # plus the fused (rt, 2) side input), with headroom, never above 90% VMEM.
    block_bytes = rt * ct * itemsize
    work_bytes = 4 * block_bytes + 2 * rt * 2 * 4
    vmem_limit = int(min(0.9 * vmem_cap, max(2 * work_bytes, 16 * 1024 * 1024)))

    grid_spec = pltpu.PrefetchScalarGridSpec(
        num_scalar_prefetch=0,
        grid=grid,
        in_specs=[
            pl.BlockSpec((rt, ct), lambda i, j: (i, j)),   # x slab
            pl.BlockSpec((rt, 2), lambda i, j: (i, 0)),    # fused (scale, bias)
        ],
        out_specs=pl.BlockSpec((rt, ct), lambda i, j: (i, j)),
    )

    y2 = pl.pallas_call(
        _affine_kernel,
        out_shape=jax.ShapeDtypeStruct((rows, HW), x_nchw.dtype),
        grid_spec=grid_spec,
        compiler_params=pltpu.CompilerParams(
            dimension_semantics=("parallel", "parallel"),
            vmem_limit_bytes=vmem_limit,
        ),
        input_output_aliases=({0: 0} if donate_x else {}),
    )(x2, ab_rows)

    y_nchw = y2.reshape(N, C, H, W)
    if logpx is None:
        return y_nchw, None, logdet
    return y_nchw, lp_out, logdet


# --------------------------------------------------------------------------- #
# Pure-JAX reference mirroring the PyTorch container semantics (per-layer).
# --------------------------------------------------------------------------- #
def _reference(x_nchw, scales, biases, logpx=None, reverse=False):
    N, C, H, W = x_nchw.shape
    HW = H * W
    L = scales.shape[0]
    x = x_nchw.astype(jnp.float32)
    inds = range(L - 1, -1, -1) if reverse else range(L)
    logdet = None
    lp = logpx
    for l in inds:
        s = scales[l].reshape(1, C, 1, 1).astype(jnp.float32)
        b = biases[l].reshape(1, C, 1, 1).astype(jnp.float32)
        if reverse:
            x = (x - b) * jnp.exp(-s)
            ld_l = -HW * jnp.sum(scales[l].astype(jnp.float32))
        else:
            x = x * jnp.exp(s) + b
            ld_l = HW * jnp.sum(scales[l].astype(jnp.float32))
        ld_l = jnp.broadcast_to(ld_l, (N, 1))
        if lp is not None:
            lp = lp - ld_l
        logdet = ld_l if logdet is None else logdet + ld_l
    return x, lp, logdet


if __name__ == "__main__":
    key = jax.random.PRNGKey(0)
    k1, k2, k3, k4 = jax.random.split(key, 4)

    N, C, H, W = 2, 4, 16, 16
    L = 3  # number of flow layers in the chain

    x = jax.random.normal(k1, (N, C, H, W), dtype=jnp.float32)
    scales = 0.1 * jax.random.normal(k2, (L, C), dtype=jnp.float32)
    biases = 0.1 * jax.random.normal(k3, (L, C), dtype=jnp.float32)
    logpx = jax.random.normal(k4, (N, 1), dtype=jnp.float32)

    # forward pass (logpx provided)
    y, lp_out, logdet = sequential_flow(x, scales, biases, logpx=logpx,
                                        reverse=False)
    jax.block_until_ready((y, lp_out, logdet))

    y_ref, lp_ref, ld_ref = _reference(x, scales, biases, logpx=logpx,
                                       reverse=False)
    assert np.allclose(np.asarray(y), np.asarray(y_ref), atol=1e-5)
    assert np.allclose(np.asarray(lp_out), np.asarray(lp_ref), atol=1e-4)
    assert np.allclose(np.asarray(logdet), np.asarray(ld_ref), atol=1e-4)

    # reverse pass (logpx=None branch) — should invert the forward transform
    x_rec, none_out, logdet_rev = sequential_flow(y, scales, biases,
                                                  logpx=None, reverse=True)
    jax.block_until_ready((x_rec, logdet_rev))
    assert none_out is None
    assert np.allclose(np.asarray(x_rec), np.asarray(x), atol=1e-4)
    assert np.allclose(np.asarray(logdet), -np.asarray(logdet_rev), atol=1e-4)

    # bf16 path (exercises dtype-aware sublane tiling); loose tolerance
    xb = x.astype(jnp.bfloat16)
    yb, _, _ = sequential_flow(xb, scales, biases, logpx=None, reverse=False)
    jax.block_until_ready(yb)
    assert yb.dtype == jnp.bfloat16
    assert np.allclose(np.asarray(yb.astype(jnp.float32)), np.asarray(y_ref),
                       atol=5e-2)

    print("KERNEL_OK")
</pallas_src>

<mosaic_0001>
module attributes {stable_mosaic.version = 11 : i64} {
  func.func @_affine_kernel(%arg0: i32, %arg1: i32, %arg2: memref<8x128xf32, #tpu.memory_space<vmem>>, %arg3: memref<8x2xf32, #tpu.memory_space<vmem>>, %arg4: memref<8x128xf32, #tpu.memory_space<vmem>>) attributes {dimension_semantics = [#tpu.dimension_semantics<parallel>, #tpu.dimension_semantics<parallel>], iteration_bounds = array<i64: 1, 2>, scalar_prefetch = 0 : i64, scratch_operands = 0 : i64, tpu.core_type = #tpu.core_type<tc>, window_params = [{transform_indices = @transform_0, window_bounds = array<i64: 8, 128>}, {transform_indices = @transform_1, window_bounds = array<i64: 8, 2>}, {transform_indices = @transform_2, window_bounds = array<i64: 8, 128>}]} {
    %c0 = arith.constant 0 : index
    %c0_0 = arith.constant 0 : index
    %0 = vector.load %arg2[%c0, %c0_0] : memref<8x128xf32, #tpu.memory_space<vmem>>, vector<8x128xf32>
    %c0_1 = arith.constant 0 : index
    %c0_2 = arith.constant 0 : index
    %1 = vector.load %arg3[%c0_1, %c0_2] : memref<8x2xf32, #tpu.memory_space<vmem>>, vector<8x2xf32>
    %2 = vector.extract_strided_slice %1 {offsets = [0, 0], sizes = [8, 1], strides = [1, 1]} : vector<8x2xf32> to vector<8x1xf32>
    %3 = vector.extract_strided_slice %1 {offsets = [0, 1], sizes = [8, 1], strides = [1, 1]} : vector<8x2xf32> to vector<8x1xf32>
    %4 = vector.broadcast %2 : vector<8x1xf32> to vector<8x128xf32>
    %5 = arith.mulf %0, %4 : vector<8x128xf32>
    %6 = vector.broadcast %3 : vector<8x1xf32> to vector<8x128xf32>
    %7 = arith.addf %5, %6 : vector<8x128xf32>
    %c0_3 = arith.constant 0 : index
    %c0_4 = arith.constant 0 : index
    %8 = vector.load %arg4[%c0_3, %c0_4] : memref<8x128xf32, #tpu.memory_space<vmem>>, vector<8x128xf32>
    tpu.vector_store %arg4[%c0_3, %c0_4], %7 {strides = array<i32>} : memref<8x128xf32, #tpu.memory_space<vmem>>, vector<8x128xf32>,
    return
  }
  func.func @transform_0(%arg0: i32, %arg1: i32) -> (i32, i32) {
    %c0_i32 = arith.constant 0 : i32
    return %arg0, %arg1 : i32, i32
  }
  func.func @transform_1(%arg0: i32, %arg1: i32) -> (i32, i32) {
    %c0_i32 = arith.constant 0 : i32
    %c0_i32_0 = arith.constant 0 : i32
    return %arg0, %c0_i32 : i32, i32
  }
  func.func @transform_2(%arg0: i32, %arg1: i32) -> (i32, i32) {
    %c0_i32 = arith.constant 0 : i32
    return %arg0, %arg1 : i32, i32
  }
}

</mosaic_0001>

<bundles_post_ra>
// kernel: tpu_custom_call.1
= control target key start
LH: loop header
LB: loop body
LE: loop exit
PB: predicated region body
PF: predicated region fallthrough
CT: control target
= control target key end

     0   :  { %7 = vsyncpa [#allocation3], 0  ;;  %s709_s0 = inlined_call_operand.hbm [shape: f32[8,256], index: 0, kind: input, shape index: {}]   ;;  %s710_s1 = inlined_call_operand.vmem [shape: f32[8,2], index: 1, kind: input, shape index: {}]   ;;  %s711_s2 = inlined_call_operand.hbm [shape: f32[8,256], index: 2, kind: output, shape index: {}]  }
   0x1   :  { %9 = vsyncpa [#allocation3 + $0x1], 0 }
   0x2   :  { %10 = vsyncpa [#allocation4], 0 }
   0x3   :  { %12 = vsyncpa [#allocation4 + $0x1], 0  ;;  %s534_s9 = smov 0   ;;  %s536_s10 = smov 0  }
   0x4   :  { %s538_s11 = smov 0   ;;  %s540_s12 = smov 0  }
   0x5   :  { %s542_s13 = smov 0   ;;  %s544_s14 = smov 0  }
   0x6 LB: > { %s321_s15 = sadd.s32 4294967295, %s513_s14   ;;  %s322_s16 = sadd.s32 4294967294, %s513_s14   ;;  %s513_s14 = sphi %s544_s14, %s18_s14   ;;  %s509_s13 = sphi %s542_s13, %s727_s13   ;;  %s505_s12 = sphi %s540_s12, %s726_s12   ;;  %s501_s11 = sphi %s538_s11, %s725_s11   ;;  %s497_s10 = sphi %s536_s10, %s724_s10   ;;  %s493_s9 = sphi %s534_s9, %s723_s9  }
   0x7   : > { %s27_s17 = sadd.s32 1, %s509_s13  ;;  %s39_s18 = sadd.s32 1, %s501_s11 }
   0x8   : > { %p28_p0 = scmp.ge.s32.totalorder %s27_s17, 2  ;;  %p46_p1 = scmp.ne.s32.totalorder %s501_s11, %s497_s10 }
   0x9   : > { %p47_p2 = scmp.eq.s32.totalorder %s513_s14, 0  ;;  %p52_p3 = scmp.ne.s32.totalorder %s497_s10, %s493_s9 }
   0xa   : > { %s729_s17 = smov (%p28_p0, %s27_s17), 0  ;;  %p53_p5 = scmp.eq.s32.totalorder %s321_s15, 0 }
   0xb   : > { %p575_p4 = por %p47_p2, %p46_p1  ;;  %s35_s20 = ssub.s32 %s509_s13, %s729_s17 }
   0xc   : > { %p104_p6 = scmp.eq.s32.totalorder %s321_s15, 1  ;;  %p37_p7 = scmp.eq.s32.totalorder %s35_s20, 0 }
   0xd   : > { %p581_p8 = por %p53_p5, %p52_p3  ;;  %p110_p10 = scmp.eq.s32.totalorder %s322_s16, 1 }
   0xe   : > { %p585_p9 = por %p104_p6, %p46_p1  ;;  %p347_p13 = scmp.lt.s32.totalorder %s513_s14, 2 }
   0xf   : > { %s590_s23 = scalar_select %p37_p7, %s501_s11, %s39_s18  }
  0x10   : > { %s715_s22 = scalar_select %p585_p9, 1, 0 }
  0x11   : > { %p592_p11 = por %p110_p10, %p52_p3  ;;  %s137_s25 = sand.u32 1, %s501_s11  }
  0x12   : > { %s326_s26 = sshll.u32 %s137_s25, 3  ;;  %s327_s27 = sshll.u32 %s509_s13, 7 }
  0x13   : > { %s716_s24 = scalar_select %p592_p11, 1, 0 }
  0x14   : > { %s603_s30 = scalar_lea.hbm %s709_s0, %s327_s27  ;;  %s141_s3 = scalar_lea.vmem [#allocation2], %s326_s26 }
  0x15   : > { %s150_s4 = sshll.u32 %s141_s3, 4  ;;  %p609_p0 = pnand %p347_p13, %p575_p4  ;;  %s605_s4 = int_to_ptr.vmem [resolvable:$true] %s150_s4 }
  0x16   : > { %s138_s6 = scalar_lea.sflag [#allocation3], %s137_s25  ;;  %s401_s7 = scalar_lea.hbm %s603_s30, 128 }
  0x17   : > { %p402_p3 = scmp.ne.s32.totalorder %s603_s30, %s401_s7  ;;  %p403_p5 = pneg %p609_p0 }
  0x18   : > { %s406_s16 = scalar_lea.hbm %s709_s0, 256  ;;  %p407_p4 = scmp.lt.u32.totalorder %s603_s30, %s709_s0 }
  0x19   : > { %p404_p6 = pnand %p403_p5, %p402_p3  ;;  %p408_p10 = scmp.lt.u32.totalorder %s406_s16, %s401_s7 }
  0x1a   : > { %p410_p12 = scmp.lt.u32.totalorder %s401_s7, %s603_s30 }
  0x1b   : > { %p405_p7 = pneg %p404_p6  ;;  %p409_p13 = por %p408_p10, %p407_p4 }
  0x1d   : > { %p411_p1 = por %p410_p12, %p409_p13 }
  0x1f   : > { %p412_p2 = pnand %p411_p1, %p405_p7 }
  0x21   : > { %415 = shalt.err (!%p412_p2)
}
  0x22   : > { %s416_s20 = scalar_lea.vmem %s605_s4, 128  ;;  %s515_s25 = smov [#allocation2]  }
  0x23   : > { %p417_p3 = scmp.ne.s32.totalorder %s605_s4, %s416_s20  ;;  %s421_s26 = sshll.u32 %s515_s25, 4  ;;  %s422_s26 = int_to_ptr.vmem [resolvable:$false] %s421_s26 }
  0x24   : > { %s423_s27 = scalar_lea.vmem %s422_s26, 256  ;;  %p424_p9 = scmp.lt.s32.totalorder %s605_s4, %s422_s26 }
  0x25   : > { %p419_p6 = pnand %p417_p3, %p403_p5  ;;  %p425_p4 = scmp.lt.s32.totalorder %s423_s27, %s416_s20 }
  0x27   : > { %p420_p11 = pneg %p419_p6  ;;  %p426_p10 = por %p425_p4, %p424_p9 }
  0x29   : > { %p427_p12 = pnand %p426_p10, %p420_p11 }
  0x2b   : > { %430 = shalt.err (!%p427_p12)
}
  0x2c   : > { %342 = dma.hbm_to_vmem [thread:$0]  (!%p609_p0), %s603_s30, 128, %s605_s4, %s138_s6  }
  0x2d   : > { %p718_p1 = scmp.lt.s32.totalorder %s513_s14, 3  ;;  %p719_p2 = scmp.ge.s32.totalorder %s513_s14, 1 }
  0x2f   : > { %p156_p5 = pnand %p719_p2, %p718_p1 }
  0x30   : > { %s645_s28 = sand.u32 (!%p156_p5), 1, %s497_s10  }
  0x31   : > { %159 = sbr.rel (%p156_p5) target bundleno = 208 (0xd0), region = 28  ;;  %s329_s29 = sshll.u32 (!%p156_p5), %s645_s28, 3 }
  0x32   : > { %s162_s3 = scalar_lea.sflag (!%p156_p5), [#allocation3], %s645_s28  ;;  %s165_s7 = scalar_lea.vmem (!%p156_p5), [#allocation2], %s329_s29 }
  0x38   : > { %484 = dma.done.wait (%p581_p8), %s162_s3, 128  }
  0x39   : > { %486 = vsyncadd (%p581_p8), %s162_s3, 4294967168  ;;  %v516_v0 = vmov 0   ;;  %v195_v1 = vld [vmem:[%s710_s1] sm:$0xff]  ;;  %v517_v2 = vmov 1   ;;  %s332_s5 = sshll.u32 %s505_s12, 7  ;;  %s189_s6 = scalar_lea.vmem [#allocation5], %s329_s29 }
  0x3a   : > { %399 = vset.pattern.permute.xlu0 %v516_v0  ;;  %v194_v4 = vld [vmem:[%s165_s7] sm:$0xff]  ;;  %s224_s8 = sshll.u32 %s189_s6, 4  ;;  %s660_s16 = scalar_lea.hbm %s711_s2, %s332_s5  ;;  %s662_s8 = int_to_ptr.vmem [resolvable:$true] %s224_s8 }
  0x3b   : > { %198 = vperm.xlu0 %399, %v195_v1   ;;  %s209_s18 = scalar_lea.sflag [#allocation4], %s645_s28  ;;  %s431_s19 = scalar_lea.vmem %s662_s8, 128 }
  0x3c   : > { %p432_p8 = scmp.ne.s32.totalorder %s662_s8, %s431_s19  ;;  %p720_p9 = scmp.ne.s32.totalorder %s715_s22, 0 }
  0x3d   : > { %s518_s12 = smov [#allocation5]  }
  0x3e   : > { %p433_p11 = pnand %p432_p8, %p720_p9  ;;  %s435_s20 = sshll.u32 %s518_s12, 4  ;;  %s436_s20 = int_to_ptr.vmem [resolvable:$false] %s435_s20 }
  0x3f   : > { %400 = vset.pattern.permute.xlu0 %v517_v2  ;;  %s437_s25 = scalar_lea.vmem %s436_s20, 256  ;;  %p438_p7 = scmp.lt.s32.totalorder %s662_s8, %s436_s20 }
  0x40   : > { %203 = vperm.xlu0 %400, %v195_v1   ;;  %p434_p0 = pneg %p433_p11  ;;  %p439_p13 = scmp.lt.s32.totalorder %s437_s25, %s431_s19 }
  0x42   : > { %p440_p3 = por %p439_p13, %p438_p7 }
  0x44   : > { %p441_p6 = pnand %p440_p3, %p434_p0 }
  0xba   : > { %v199_v3 = vpop.permute.xlu0 %198 }
  0xbb   : > { %v201_v5 = vmul.f32 %v199_v3, %v194_v4 }
  0xbf   : > { %v204_v6 = vpop.permute.xlu0 %203 }
  0xc0   : > { %v206_v7 = vadd.f32 %v204_v6, %v201_v5 }
  0xc2   : > { %207 = vst [vmem:[%s189_s6] sm:$0xff] %v206_v7 }
  0xc3   : > { %444 = shalt.err (!%p441_p6)
}
  0xc4   : > { %s445_s26 = scalar_lea.hbm %s660_s16, 128  ;;  %s449_s29 = scalar_lea.hbm %s711_s2, 256 }
  0xc5   : > { %p446_p4 = scmp.ne.s32.totalorder %s660_s16, %s445_s26  ;;  %p450_p1 = scmp.lt.u32.totalorder %s660_s16, %s711_s2 }
  0xc6   : > { %p451_p2 = scmp.lt.u32.totalorder %s449_s29, %s445_s26  ;;  %p453_p8 = scmp.lt.u32.totalorder %s445_s26, %s660_s16 }
  0xc7   : > { %p447_p10 = pnand %p446_p4, %p720_p9 }
  0xc8   : > { %p452_p5 = por %p451_p2, %p450_p1 }
  0xc9   : > { %p448_p12 = pneg %p447_p10 }
  0xca   : > { %p454_p11 = por %p453_p8, %p452_p5 }
  0xcc   : > { %p455_p0 = pnand %p454_p11, %p448_p12 }
  0xce   : > { %458 = shalt.err (!%p455_p0)
}
  0xcf   : > { %337 = dma.vmem_to_hbm [thread:$0]  (%p720_p9), %s662_s8, 128, %s660_s16, %s209_s18  }
  0xd0 PF: > { %s236_s30 = sand.u32 1, %s493_s9   ;;  %p721_p7 = scmp.ne.s32.totalorder %s716_s24, 0 }
  0xd1   : > { %p722_p13 = scmp.ge.s32.totalorder %s513_s14, 2  ;;  %s237_s4 = scalar_lea.sflag [#allocation4], %s236_s30 }
  0xd3   : > { %p344_p3 = pnand %p722_p13, %p721_p7 }
  0xd5   : > { %488 = dma.done.wait (!%p344_p3), %s237_s4, 128  }
  0xd6   : > { %490 = vsyncadd (!%p344_p3), %s237_s4, 4294967168  ;;  %s18_s14 = sadd.s32 1, %s513_s14   ;;  %s723_s9 = smov %s497_s10 }
  0xd7   : > { %p15_p6 = scmp.ge.s32.totalorder %s18_s14, 4   ;;  %s724_s10 = smov %s501_s11 }
  0xd8   : > { %s725_s11 = smov %s590_s23  ;;  %s726_s12 = smov %s509_s13 }
  0xd9   : > { %s727_s13 = smov %s729_s17  ;;  %17 = sbr.rel (!%p15_p6) target bundleno = 6 (0x6), region = 76 }
  0xe0   :  { %242 = vsyncpa [#allocation3], 1 }
  0xe1   :  { %244 = vsyncpa [#allocation3 + $0x1], 1 }
  0xe2   :  { %245 = vsyncpa [#allocation4], 1 }
  0xe3   :  { %247 = vsyncpa [#allocation4 + $0x1], 1 }

</bundles_post_ra>
